<compile_context>
chip_gen: v5e
topology: v5e:2x2
jax: 0.10.0
libtpu: 0.0.40
codegen_flags: <defaults>
</compile_context>

<pallas_src>
import functools

import jax
import jax.numpy as jnp
from jax.experimental import pallas as pl
from jax.experimental.pallas import tpu as pltpu

ALPHA = 0.25
GAMMA = 2.0  # exponent is exactly 2 -> use z*z instead of pow (avoids exp/log on EUP)
EPS = 1e-8


# ----------------------------------------------------------------------------
# Pallas kernel: sigmoid focal loss, tiled over rows of the flattened [B*Q, C]
# logits.  Emits one partial sum per grid step; the wrapper sums them in JAX.
# ----------------------------------------------------------------------------
def _focal_kernel(logits_ref, labels_ref, out_ref, *, alpha):
    x = logits_ref[...].astype(jnp.float32)          # [TQ, C]
    lbl = labels_ref[...]                             # [TQ, 1] int32 (-1 = padded row)
    tq, c = x.shape

    # One-hot built on the fly (saves a full [B,Q,C] f32 HBM stream).
    t = (jax.lax.broadcasted_iota(jnp.int32, (tq, c), 1) == lbl).astype(jnp.float32)
    valid = (lbl >= 0).astype(jnp.float32)             # [TQ, 1] row-validity mask

    # Share e = exp(-|x|) between the stable BCE term and the sigmoid.
    ax = jnp.abs(x)
    e = jnp.exp(-ax)                                   # 1 EUP exp
    ce = jnp.maximum(x, 0.0) - x * t + jnp.log1p(e)    # BCE-with-logits, reduction='none'
    r = pl.reciprocal(1.0 + e, approx=True)            # EUP recip (free slot)
    prob = jnp.where(x >= 0.0, r, e * r)               # sigmoid(x)

    p_t = prob * t + (1.0 - prob) * (1.0 - t)
    z = 1.0 - p_t
    alpha_t = alpha * t + (1.0 - alpha) * (1.0 - t)
    loss = alpha_t * ce * (z * z) * valid              # gamma == 2 -> explicit square

    # Lane-dense partial-sum block (distinct block per grid step -> "parallel" OK).
    out_ref[...] = jnp.broadcast_to(jnp.sum(loss), out_ref.shape).astype(jnp.float32)


def sigmoid_focal_loss_sum(logits, target_classes, *, alpha=ALPHA,
                           block_rows=512, compute_dtype=jnp.bfloat16):
    """Returns sum over all elements of the focal loss (reference's loss.sum())."""
    B, Q, C = logits.shape
    R = B * Q

    # bf16 halves HBM bytes of the dominant input; kernel upcasts to f32.
    x = logits.astype(compute_dtype).reshape(R, C)
    labels = target_classes.reshape(R).astype(jnp.int32)

    # Tile rows; keep tiles a multiple of 16 (bf16 sublane packing) and pad rows.
    tq = block_rows
    if R <= tq:
        tq = max(16, ((R + 15) // 16) * 16)
    r_pad = ((R + tq - 1) // tq) * tq
    if r_pad != R:
        x = jnp.pad(x, ((0, r_pad - R), (0, 0)))
        labels = jnp.pad(labels, (0, r_pad - R), constant_values=-1)
    labels2d = labels.reshape(r_pad, 1)
    nb = r_pad // tq

    partials = pl.pallas_call(
        functools.partial(_focal_kernel, alpha=alpha),
        out_shape=jax.ShapeDtypeStruct((nb, 1, 128), jnp.float32),
        grid=(nb,),
        in_specs=[
            pl.BlockSpec((tq, C), lambda i: (i, 0)),   # logits tile (double-buffered)
            pl.BlockSpec((tq, 1), lambda i: (i, 0)),   # int labels tile
        ],
        out_specs=pl.BlockSpec((1, 1, 128), lambda i: (i, 0, 0)),
        compiler_params=pltpu.CompilerParams(dimension_semantics=("parallel",)),
    )(x, labels2d)
    return jnp.sum(partials[:, 0, 0])


# ----------------------------------------------------------------------------
# Pallas kernel: box losses (L1 sum + sum of (1 - diag(GIoU))), lane-dense [4, Npad]
# ----------------------------------------------------------------------------
def _box_loss_kernel(src_ref, tgt_ref, out_ref, *, n_valid):
    s = src_ref[...].astype(jnp.float32)   # [4, NP] rows = (cx, cy, w, h)
    t = tgt_ref[...].astype(jnp.float32)
    npad = s.shape[1]

    lane = jax.lax.broadcasted_iota(jnp.int32, (1, npad), 1)
    valid = (lane < n_valid).astype(jnp.float32)        # [1, NP]

    # L1 regression loss (sum over all valid elements)
    l1 = jnp.sum(jnp.abs(s - t) * valid)

    def to_xyxy(b):
        cx, cy, w, h = b[0:1], b[1:2], b[2:3], b[3:4]   # cheap sublane selects
        return cx - 0.5 * w, cy - 0.5 * h, cx + 0.5 * w, cy + 0.5 * h

    sx0, sy0, sx1, sy1 = to_xyxy(s)
    tx0, ty0, tx1, ty1 = to_xyxy(t)

    area_s = (sx1 - sx0) * (sy1 - sy0)
    area_t = (tx1 - tx0) * (ty1 - ty0)

    # only the diagonal of generalized_box_iou is needed -> per-lane computation
    ix0 = jnp.maximum(sx0, tx0)
    iy0 = jnp.maximum(sy0, ty0)
    ix1 = jnp.minimum(sx1, tx1)
    iy1 = jnp.minimum(sy1, ty1)
    inter = jnp.maximum(ix1 - ix0, 0.0) * jnp.maximum(iy1 - iy0, 0.0)
    union = area_s + area_t - inter
    iou = inter / (union + EPS)

    cx0 = jnp.minimum(sx0, tx0)
    cy0 = jnp.minimum(sy0, ty0)
    cx1 = jnp.maximum(sx1, tx1)
    cy1 = jnp.maximum(sy1, ty1)
    area_c = jnp.maximum(cx1 - cx0, 0.0) * jnp.maximum(cy1 - cy0, 0.0)
    giou = iou - (area_c - union) / (area_c + EPS)

    out_ref[0, 0] = l1
    out_ref[0, 1] = jnp.sum((1.0 - giou) * valid)


def box_losses(src_boxes, tgt_boxes):
    """src/tgt: [N, 4] cxcywh (N may be 0). Returns (l1_sum, giou_sum)."""
    n = int(src_boxes.shape[0])
    npad = max(128, ((n + 127) // 128) * 128)
    s = jnp.pad(src_boxes.astype(jnp.float32).T, ((0, 0), (0, npad - n)))
    t = jnp.pad(tgt_boxes.astype(jnp.float32).T, ((0, 0), (0, npad - n)))

    out = pl.pallas_call(
        functools.partial(_box_loss_kernel, n_valid=n),
        out_shape=jax.ShapeDtypeStruct((1, 2), jnp.float32),
        in_specs=[
            pl.BlockSpec(memory_space=pltpu.MemorySpace.VMEM),
            pl.BlockSpec(memory_space=pltpu.MemorySpace.VMEM),
        ],
        out_specs=pl.BlockSpec(memory_space=pltpu.MemorySpace.SMEM),
    )(s, t)
    return out[0, 0], out[0, 1]


# ----------------------------------------------------------------------------
# SetCriterion equivalent (losses = ['labels', 'cardinality', 'boxes'])
# ----------------------------------------------------------------------------
class SetCriterionPallas:
    def __init__(self, num_classes, eos_coef=0.1):
        self.num_classes = num_classes
        self.eos_coef = eos_coef
        # buffer 'empty_weight' (unused by the focal-loss label path, kept for fidelity)
        self.empty_weight = jnp.ones((num_classes + 1,), jnp.float32).at[-1].set(eos_coef)

    @staticmethod
    def _get_src_permutation_idx(indices):
        batch_idx = jnp.concatenate(
            [jnp.full_like(src, i) for i, (src, _) in enumerate(indices)])
        src_idx = jnp.concatenate([src for src, _ in indices])
        return batch_idx, src_idx

    def forward(self, outputs, targets, indices):
        pred_logits = outputs['pred_logits']
        pred_boxes = outputs['pred_boxes']
        B, Q, C = pred_logits.shape

        # num_boxes (no distributed all_reduce; world_size = 1)
        num_boxes = float(max(sum(int(t['labels'].shape[0]) for t in targets), 1))

        batch_idx, src_idx = self._get_src_permutation_idx(indices)
        target_classes_o = jnp.concatenate(
            [t['labels'][J] for t, (_, J) in zip(targets, indices)])

        # target_classes full of `num_classes` ("no object"), scatter matched labels.
        # The one-hot over C classes is built inside the Pallas kernel from these ints
        # (a label == num_classes, i.e. the dropped last column, yields an all-zero row).
        target_classes = jnp.full((B, Q), self.num_classes, dtype=jnp.int32)
        target_classes = target_classes.at[batch_idx, src_idx].set(target_classes_o)

        # ---- loss_labels (Pallas focal-loss kernel, tiled + bf16 input) ----
        focal_sum = sigmoid_focal_loss_sum(pred_logits, target_classes, alpha=ALPHA)
        focal = focal_sum / float(Q) / num_boxes          # == sigmoid_focal_loss(...)
        loss_ce = focal * Q

        # class_error (logging): 100 - top1 accuracy on matched predictions
        # TODO(synk): could be fused into the focal kernel as an extra per-row argmax
        # output to save one more pass over pred_logits; kept in XLA for clarity.
        matched_logits = pred_logits[batch_idx, src_idx]
        acc = jnp.mean(
            (jnp.argmax(matched_logits, axis=-1) == target_classes_o).astype(jnp.float32)
        ) * 100.0
        class_error = 100.0 - acc

        # ---- loss_cardinality (logging only, plain JAX) ----
        # Matches reference exactly: compares argmax against pred_logits.shape[-1] - 1.
        tgt_lengths = jnp.asarray([t['labels'].shape[0] for t in targets], jnp.float32)
        card_pred = jnp.sum(
            (jnp.argmax(pred_logits, axis=-1) != (C - 1)).astype(jnp.float32), axis=1)
        cardinality_error = jnp.mean(jnp.abs(card_pred - tgt_lengths))

        # ---- loss_boxes (Pallas L1 + GIoU kernel, lane-dense [4, Npad] layout) ----
        src_boxes = pred_boxes[batch_idx, src_idx]
        target_boxes = jnp.concatenate(
            [t['boxes'][i] for t, (_, i) in zip(targets, indices)], axis=0)
        l1_sum, giou_sum = box_losses(src_boxes, target_boxes)
        loss_bbox = l1_sum / num_boxes
        loss_giou = giou_sum / num_boxes

        # TODO(synk): 'masks' loss depends on monai DiceCELoss + external focal_loss_masks;
        # no clean Pallas equivalent provided here.
        return {
            'loss_ce': loss_ce,
            'class_error': class_error,
            'cardinality_error': cardinality_error,
            'loss_bbox': loss_bbox,
            'loss_giou': loss_giou,
        }


if __name__ == "__main__":
    B, Q, C = 2, 8, 4          # batch, queries, num_classes (focal-loss DETR head)
    num_tgt = [3, 2]           # ground-truth boxes per image

    key = jax.random.PRNGKey(0)
    k_logits, k_boxes, k_tgt = jax.random.split(key, 3)

    outputs = {
        'pred_logits': jax.random.normal(k_logits, (B, Q, C), jnp.float32),
        'pred_boxes': jax.nn.sigmoid(jax.random.normal(k_boxes, (B, Q, 4), jnp.float32)),
    }

    targets = []
    for b in range(B):
        kl, kb = jax.random.split(jax.random.fold_in(k_tgt, b))
        targets.append({
            'labels': jax.random.randint(kl, (num_tgt[b],), 0, C, dtype=jnp.int32),
            'boxes': jax.nn.sigmoid(jax.random.normal(kb, (num_tgt[b], 4), jnp.float32)),
        })

    # TODO(synk): Hungarian matcher has no clean Pallas equivalent; use a deterministic
    # identity matching (query i <-> target i) in place of self.matcher.
    indices = [(jnp.arange(num_tgt[b], dtype=jnp.int32),
                jnp.arange(num_tgt[b], dtype=jnp.int32)) for b in range(B)]

    criterion = SetCriterionPallas(num_classes=C, eos_coef=0.1)
    losses = criterion.forward(outputs, targets, indices)
    losses = jax.tree_util.tree_map(jax.block_until_ready, losses)

    print("KERNEL_OK")
</pallas_src>

<mosaic_0001>
module attributes {stable_mosaic.version = 11 : i64} {
  func.func @_focal_kernel(%arg0: i32, %arg1: memref<16x4xbf16, #tpu.memory_space<vmem>>, %arg2: memref<16x1xi32, #tpu.memory_space<vmem>>, %arg3: memref<1x1x128xf32, #tpu.memory_space<vmem>>) attributes {dimension_semantics = [#tpu.dimension_semantics<parallel>], iteration_bounds = array<i64: 1>, scalar_prefetch = 0 : i64, scratch_operands = 0 : i64, tpu.core_type = #tpu.core_type<tc>, window_params = [{transform_indices = @transform_0, window_bounds = array<i64: 16, 4>}, {transform_indices = @transform_1, window_bounds = array<i64: 16, 1>}, {transform_indices = @transform_2, window_bounds = array<i64: 1, 1, 128>}]} {
    %c0 = arith.constant 0 : index
    %c0_0 = arith.constant 0 : index
    %0 = vector.load %arg1[%c0, %c0_0] : memref<16x4xbf16, #tpu.memory_space<vmem>>, vector<16x4xbf16>
    %1 = arith.extf %0 : vector<16x4xbf16> to vector<16x4xf32>
    %c0_1 = arith.constant 0 : index
    %c0_2 = arith.constant 0 : index
    %2 = vector.load %arg2[%c0_1, %c0_2] : memref<16x1xi32, #tpu.memory_space<vmem>>, vector<16x1xi32>
    %3 = tpu.iota {dimensions = array<i32: 1>} : vector<16x4xi32>
    %4 = vector.broadcast %2 : vector<16x1xi32> to vector<16x4xi32>
    %5 = arith.cmpi eq, %3, %4 : vector<16x4xi32>
    %6 = arith.extui %5 : vector<16x4xi1> to vector<16x4xi32>
    %7 = arith.sitofp %6 : vector<16x4xi32> to vector<16x4xf32>
    %c0_i32 = arith.constant 0 : i32
    %8 = vector.broadcast %c0_i32 : i32 to vector<16x1xi32>
    %9 = arith.cmpi sge, %2, %8 : vector<16x1xi32>
    %10 = arith.extui %9 : vector<16x1xi1> to vector<16x1xi32>
    %11 = arith.sitofp %10 : vector<16x1xi32> to vector<16x1xf32>
    %12 = math.absf %1 : vector<16x4xf32>
    %cst = arith.constant 0.000000e+00 : f32
    %13 = vector.broadcast %cst : f32 to vector<16x4xf32>
    %14 = arith.subf %13, %12 : vector<16x4xf32>
    %15 = math.exp %14 : vector<16x4xf32>
    %cst_3 = arith.constant 0.000000e+00 : f32
    %16 = vector.broadcast %cst_3 : f32 to vector<16x4xf32>
    %17 = arith.maximumf %1, %16 : vector<16x4xf32>
    %18 = arith.mulf %1, %7 : vector<16x4xf32>
    %19 = arith.subf %17, %18 : vector<16x4xf32>
    %20 = math.log1p %15 : vector<16x4xf32>
    %21 = arith.addf %19, %20 : vector<16x4xf32>
    %cst_4 = arith.constant 1.000000e+00 : f32
    %22 = vector.broadcast %cst_4 : f32 to vector<16x4xf32>
    %23 = arith.addf %22, %15 : vector<16x4xf32>
    %24 = tpu.reciprocal %23 {approx = true} : vector<16x4xf32> -> vector<16x4xf32>
    %cst_5 = arith.constant 0.000000e+00 : f32
    %25 = vector.broadcast %cst_5 : f32 to vector<16x4xf32>
    %26 = arith.cmpf oge, %1, %25 : vector<16x4xf32>
    %27 = arith.mulf %15, %24 : vector<16x4xf32>
    %28 = arith.select %26, %24, %27 : vector<16x4xi1>, vector<16x4xf32>
    %29 = arith.mulf %28, %7 : vector<16x4xf32>
    %cst_6 = arith.constant 1.000000e+00 : f32
    %30 = vector.broadcast %cst_6 : f32 to vector<16x4xf32>
    %31 = arith.subf %30, %28 : vector<16x4xf32>
    %cst_7 = arith.constant 1.000000e+00 : f32
    %32 = vector.broadcast %cst_7 : f32 to vector<16x4xf32>
    %33 = arith.subf %32, %7 : vector<16x4xf32>
    %34 = arith.mulf %31, %33 : vector<16x4xf32>
    %35 = arith.addf %29, %34 : vector<16x4xf32>
    %cst_8 = arith.constant 1.000000e+00 : f32
    %36 = vector.broadcast %cst_8 : f32 to vector<16x4xf32>
    %37 = arith.subf %36, %35 : vector<16x4xf32>
    %cst_9 = arith.constant 2.500000e-01 : f32
    %38 = vector.broadcast %cst_9 : f32 to vector<16x4xf32>
    %39 = arith.mulf %38, %7 : vector<16x4xf32>
    %cst_10 = arith.constant 1.000000e+00 : f32
    %40 = vector.broadcast %cst_10 : f32 to vector<16x4xf32>
    %41 = arith.subf %40, %7 : vector<16x4xf32>
    %cst_11 = arith.constant 7.500000e-01 : f32
    %42 = vector.broadcast %cst_11 : f32 to vector<16x4xf32>
    %43 = arith.mulf %42, %41 : vector<16x4xf32>
    %44 = arith.addf %39, %43 : vector<16x4xf32>
    %45 = arith.mulf %44, %21 : vector<16x4xf32>
    %46 = arith.mulf %37, %37 : vector<16x4xf32>
    %47 = arith.mulf %45, %46 : vector<16x4xf32>
    %48 = vector.broadcast %11 : vector<16x1xf32> to vector<16x4xf32>
    %49 = arith.mulf %47, %48 : vector<16x4xf32>
    %50 = vector.shape_cast %49 : vector<16x4xf32> to vector<1x16x4xf32>
    %cst_12 = arith.constant dense<0.000000e+00> : vector<1xf32>
    %51 = vector.multi_reduction <add>, %50, %cst_12 [1, 2] : vector<1x16x4xf32> to vector<1xf32>
    %52 = vector.shape_cast %51 : vector<1xf32> to vector<1x1x1xf32>
    %53 = vector.extract %52[0, 0, 0] : f32 from vector<1x1x1xf32>
    %54 = vector.broadcast %53 : f32 to vector<1x1x128xf32>
    %c0_13 = arith.constant 0 : index
    %c0_14 = arith.constant 0 : index
    %c0_15 = arith.constant 0 : index
    %55 = vector.load %arg3[%c0_13, %c0_14, %c0_15] : memref<1x1x128xf32, #tpu.memory_space<vmem>>, vector<1x1x128xf32>
    tpu.vector_store %arg3[%c0_13, %c0_14, %c0_15], %54 {strides = array<i32>} : memref<1x1x128xf32, #tpu.memory_space<vmem>>, vector<1x1x128xf32>,
    return
  }
  func.func @transform_0(%arg0: i32) -> (i32, i32) {
    %c0_i32 = arith.constant 0 : i32
    %c0_i32_0 = arith.constant 0 : i32
    return %arg0, %c0_i32 : i32, i32
  }
  func.func @transform_1(%arg0: i32) -> (i32, i32) {
    %c0_i32 = arith.constant 0 : i32
    %c0_i32_0 = arith.constant 0 : i32
    return %arg0, %c0_i32 : i32, i32
  }
  func.func @transform_2(%arg0: i32) -> (i32, i32, i32) {
    %c0_i32 = arith.constant 0 : i32
    %c0_i32_0 = arith.constant 0 : i32
    %c0_i32_1 = arith.constant 0 : i32
    return %arg0, %c0_i32, %c0_i32_0 : i32, i32, i32
  }
}

</mosaic_0001>

<bundles_post_ra>
// kernel: tpu_custom_call.1
= control target key start
LH: loop header
LB: loop body
LE: loop exit
PB: predicated region body
PF: predicated region fallthrough
CT: control target
= control target key end

     0   :  { %s253_s0 = inlined_call_operand.vmem [shape: bf16[16,4], index: 0, kind: input, shape index: {}]   ;;  %s254_s1 = inlined_call_operand.vmem [shape: s32[16,1], index: 1, kind: input, shape index: {}]   ;;  %s255_s2 = inlined_call_operand.hbm [shape: f32[1,1,128], index: 2, kind: output, shape index: {}]  }
   0x1   :  { %v16_v0 = vld [vmem:[%s254_s1] sm:$0xff]  ;;  %v17_v1 = vld [vmem:[%s254_s1 + $0x8] sm:$0xff] }
   0x2   :  { %7 = vsyncpa [#allocation3], 0  ;;  %v207_v2 = vmov 0   ;;  %vm32_vm0 = vcmp.ge.s32.totalorder %v16_v0, 0  ;;  %vm33_vm1 = vcmp.ge.s32.totalorder %v17_v1, 0  ;;  %v208_v3 = vmov 0.0  }
   0x3   :  { %162 = vset.pattern.permute.xlu0 %v207_v2  ;;  %163 = vset.pattern.permute.xlu1 %v207_v2  ;;  %v151_v4 = vsel %vm32_vm0, 1.0, %v208_v3  ;;  %v152_v5 = vsel %vm33_vm1, 1.0, %v208_v3  ;;  %v154_v7 = vld [vmem:[%s253_s0] sm:$0xff]   ;;  %v18_v21 = vlaneseq  ;;  %vm118_vm8 = vcmask 31744   ;;  %s209_s0 = smov [#allocation2]   ;;  %s140_s17 = sshll.u32 %s255_s2, 4  ;;  %s141_s17 = int_to_ptr.hbm [resolvable:$true] %s140_s17 }
   0x4   :  { %21 = vperm.xlu0 %162, %v16_v0   ;;  %v164_v6 = vpack.i.bf16 %v152_v5, %v151_v4  ;;  %v155_v8 = vunpack.c.l.bf16 %v154_v7  ;;  %v236_v10 = vunpack.c.h.bf16 %v154_v7  ;;  %s138_s1 = sshll.u32 %s209_s0, 4  ;;  %s139_s1 = int_to_ptr.vmem [resolvable:$true] %s138_s1 }
   0x5   :  { %v19_v24 = vand.u32 127, %v18_v21 }
   0x6   :  { %165 = vperm.xlu1 %163, %v164_v6   ;;  %v38_v9 = vand.u32 2147483647, %v155_v8  ;;  %v39_v12 = vand.u32 2147483647, %v236_v10  ;;  %vm76_vm2 = vcmp.ge.f32.partialorder %v155_v8, 0.0  ;;  %v46_v35 = vmax.f32 %v155_v8, 0.0 }
   0x7   :  { %vm77_vm4 = vcmp.ge.f32.partialorder %v236_v10, 0.0  ;;  %v47_v52 = vmax.f32 %v236_v10, 0.0 }
   0x8   :  { %v40_v11 = vsub.f32 0.0, %v38_v9  ;;  %v41_v14 = vsub.f32 0.0, %v39_v12 }
   0xa   :  { %v42_v13 = vmul.f32 1.442695, %v40_v11  ;;  %v44_v15 = vmul.f32 1.442695, %v41_v14 }
   0xc   :  { %24 = vperm.xlu0 %162, %v17_v1   ;;  %169 = vpow2.f32 %v42_v13 }
   0xd   :  { %171 = vpow2.f32 %v44_v15 }
  0x12   :  { %v170_v16 = vpop.eup %169 }
  0x13   :  { %v52_v17 = vadd.f32 1.0, %v170_v16  ;;  %v172_v18 = vpop.eup %171  ;;  %v55_v23 = vmul.f32 -0.5, %v170_v16  ;;  %v58_v30 = vand.u32 2147483647, %v170_v16 }
  0x14   :  { %v61_v19 = vadd.f32 1.0, %v172_v18  ;;  %v64_v31 = vmul.f32 -0.5, %v172_v18  ;;  %v67_v45 = vand.u32 2147483647, %v172_v18 }
  0x15   :  { %173 = vrcp.f32 %v52_v17  ;;  %v56_v27 = vadd.f32 1.0, %v55_v23  ;;  %vm241_vm5 = vcmp.lt.f32.partialorder %v58_v30, 0.0004427343 }
  0x16   :  { %175 = vrcp.f32 %v61_v19  ;;  %v65_v41 = vadd.f32 1.0, %v64_v31  ;;  %vm68_vm7 = vcmp.lt.f32.partialorder %v67_v45, 0.0004427343 }
  0x17   :  { %177 = vlog2.f32 %v52_v17  ;;  %v57_v38 = vmul.f32 %v170_v16, %v56_v27 }
  0x18   :  { %179 = vlog2.f32 %v61_v19  ;;  %v66_v54 = vmul.f32 %v172_v18, %v65_v41 }
  0x1b   :  { %v174_v20 = vpop.eup %173 }
  0x1c   :  { %v78_v22 = vmul.f32 %v174_v20, %v170_v16  ;;  %v176_v25 = vpop.eup %175 }
  0x1d   :  { %v178_v28 = vpop.eup %177  ;;  %v79_v33 = vmul.f32 %v176_v25, %v172_v18 }
  0x1e   :  { %v80_v26 = vsel %vm76_vm2, %v174_v20, %v78_v22  ;;  %v54_v37 = vmul.f32 0.6931472, %v178_v28  ;;  %v180_v42 = vpop.eup %179 }
  0x1f   :  { %v84_v32 = vsub.f32 1.0, %v80_v26  ;;  %v81_v46 = vsel %vm77_vm4, %v176_v25, %v79_v33  ;;  %v63_v53 = vmul.f32 0.6931472, %v180_v42 }
  0x20   :  { %v60_v48 = vsel %vm241_vm5, %v57_v38, %v54_v37  ;;  %v85_v55 = vsub.f32 1.0, %v81_v46 }
  0x21   :  { %v69_v63 = vsel %vm68_vm7, %v66_v54, %v63_v53 }
  0x76   :  { %v22_v29 = vpop.permute.xlu0 %21 }
  0x77   :  { %vm26_vm3 = vcmp.eq.s32.totalorder %v19_v24, %v22_v29 }
  0x78   :  { %v149_v34 = vsel %vm26_vm3, 1.0, %v208_v3  ;;  %v166_v7 = vpop.permute.xlu1 %165 }
  0x79   :  { %v48_v36 = vmul.f32 %v155_v8, %v149_v34  ;;  %v86_v39 = vsub.f32 1.0, %v149_v34  ;;  %v82_v43 = vmul.f32 %v149_v34, %v80_v26  ;;  %v94_v57 = vmul.f32 0.25, %v149_v34 }
  0x7a   :  { %v167_v14 = vunpack.i.l.bf16 %v166_v7  ;;  %v168_v15 = vunpack.i.h.bf16 %v166_v7 }
  0x7b   :  { %v88_v44 = vmul.f32 %v86_v39, %v84_v32  ;;  %v50_v47 = vsub.f32 %v46_v35, %v48_v36  ;;  %v96_v50 = vmul.f32 0.75, %v86_v39 }
  0x7d   :  { %v90_v49 = vadd.f32 %v88_v44, %v82_v43  ;;  %v70_v59 = vadd.f32 %v60_v48, %v50_v47  ;;  %v98_v60 = vadd.f32 %v96_v50, %v94_v57 }
  0x7e   :  { %v25_v51 = vpop.permute.xlu0 %24 }
  0x7f   :  { %v92_v56 = vsub.f32 1.0, %v90_v49  ;;  %vm27_vm6 = vcmp.eq.s32.totalorder %v19_v24, %v25_v51  ;;  %v100_v12 = vmul.f32 %v98_v60, %v70_v59 }
  0x80   :  { %v150_v58 = vsel %vm27_vm6, 1.0, %v208_v3 }
  0x81   :  { %v49_v61 = vmul.f32 %v236_v10, %v150_v58  ;;  %v87_v62 = vsub.f32 1.0, %v150_v58  ;;  %v83_v0 = vmul.f32 %v150_v58, %v81_v46  ;;  %v95_v1 = vmul.f32 0.25, %v150_v58 }
  0x82   :  { %v102_v6 = vmul.f32 %v92_v56, %v92_v56 }
  0x83   :  { %v51_v2 = vsub.f32 %v47_v52, %v49_v61  ;;  %v89_v4 = vmul.f32 %v87_v62, %v85_v55  ;;  %v97_v5 = vmul.f32 0.75, %v87_v62 }
  0x84   :  { %v104_v3 = vmul.f32 %v102_v6, %v100_v12 }
  0x85   :  { %v71_v8 = vadd.f32 %v69_v63, %v51_v2  ;;  %v91_v9 = vadd.f32 %v89_v4, %v83_v0  ;;  %v99_v11 = vadd.f32 %v97_v5, %v95_v1 }
  0x86   :  { %v116_v18 = vmul.f32 %v167_v14, %v104_v3 }
  0x87   :  { %v93_v13 = vsub.f32 1.0, %v91_v9  ;;  %v101_v16 = vmul.f32 %v99_v11, %v71_v8 }
  0x88   :  { %v119_v20 = vsel %vm118_vm8, %v116_v18, 0.0 }
  0x89   :  { %v103_v17 = vmul.f32 %v93_v13, %v93_v13 }
  0x8b   :  { %v105_v10 = vmul.f32 %v103_v17, %v101_v16 }
  0x8d   :  { %v117_v19 = vmul.f32 %v168_v15, %v105_v10 }
  0x8f   :  { %v120_v21 = vsel %vm118_vm8, %v117_v19, 0.0 }
  0x90   :  { %v121_v22 = vadd.f32 %v120_v21, %v119_v20 }
  0x92   :  { %122 = vadd.xlane.f32.xlu1 %v121_v22 }
 0x105   :  { %v123_v23 = vpop.xlane.xlu1 %122 }
 0x106   :  { %v124_v24 = vrot.slane %v123_v23, 4 }
 0x108   :  { %v125_v25 = vadd.f32 %v124_v24, %v123_v23 }
 0x10a   :  { %v126_v26 = vrot.slane %v125_v25, 2 }
 0x10c   :  { %v127_v27 = vadd.f32 %v126_v26, %v125_v25 }
 0x10e   :  { %v128_v28 = vrot.slane %v127_v27, 1 }
 0x110   :  { %v129_v29 = vadd.f32 %v128_v28, %v127_v27 }
 0x112   :  { %157 = vpush %v129_v29 }
 0x143   :  { %s158_s18 = spop %157 }
 0x144   :  { %v131_v30 = vstv %s158_s18 }
 0x145   :  { %132 = vst [vmem:[#allocation2] sm:$0x1] %v131_v30 }
 0x146   :  { %143 = dma.vmem_to_hbm [thread:$0]  %s139_s1, 16, %s141_s17, [#allocation3]  }
 0x147   :  { %205 = dma.done.wait [#allocation3], 16  }
 0x148   :  { %206 = vsyncadd [#allocation3], 4294967280 }
 0x149   :  { %148 = vsyncpa [#allocation3], 1 }

</bundles_post_ra>
